<compile_context>
chip_gen: v6e
topology: v6e:2x2x1
jax: 0.10.0
libtpu: 0.0.40
codegen_flags: <defaults>
</compile_context>

<pallas_src>
import functools

import jax
import jax.numpy as jnp
from jax.experimental import pallas as pl
from jax.experimental.pallas import tpu as pltpu


def _stoch_mlp_kernel(x_ref, w1_ref, b1_ref, w2_ref, b2_ref, w3_ref, b3_ref,
                      y_ref, *, min_std, out_size, compute_dtype):
    # Layer 1: (bf16 x bf16) -> f32 accumulation on the MXU.
    h = jnp.dot(x_ref[...], w1_ref[...], preferred_element_type=jnp.float32)
    h = jnp.maximum(h + b1_ref[...], 0.0)
    # Layer 2
    h = jnp.dot(h.astype(compute_dtype), w2_ref[...],
                preferred_element_type=jnp.float32)
    h = jnp.maximum(h + b2_ref[...], 0.0)
    # Output layer -> [TILE_B, 2*out_size]
    y = jnp.dot(h.astype(compute_dtype), w3_ref[...],
                preferred_element_type=jnp.float32)
    y = y + b3_ref[...]

    # Pack mean | (softplus(std_raw) + min_std) into ONE lane-dense output without
    # lane slicing (slices would materialize VMEM copies / relayouts). Applying
    # softplus to every lane is free: exp/log run on the EUP's own VLIW slot.
    lane = jax.lax.broadcasted_iota(jnp.int32, y.shape, 1)
    std_all = jnp.logaddexp(y, 0.0) + jnp.float32(min_std)
    y_ref[...] = jnp.where(lane < out_size, y, std_all)


def stoch_mlp_forward(x, params, *, min_std=0.1, squeeze=True,
                      compute_dtype=jnp.bfloat16, tile_b=512):
    """Returns (mean, std) — the parameters of the td.Normal the torch module builds."""
    w1, b1, w2, b2, w3, b3 = params
    B, input_size = x.shape
    hidden1 = w1.shape[1]
    hidden2 = w2.shape[1]
    two_out = w3.shape[1]
    out_size = two_out // 2

    # MXU operands in compute_dtype (bf16 halves HBM traffic for x, which dominates
    # once B is large); biases and all epilogue math stay f32.
    x_c = x.astype(compute_dtype)
    w1_c, w2_c, w3_c = (w.astype(compute_dtype) for w in (w1, w2, w3))
    b1_f, b2_f, b3_f = (b.astype(jnp.float32) for b in (b1, b2, b3))

    # Batch tiling: pad B up to a multiple of the tile (>= 8 for sublane alignment).
    tb = min(tile_b, max(8, -(-B // 8) * 8))
    b_pad = -(-B // tb) * tb
    if b_pad != B:
        x_c = jnp.pad(x_c, ((0, b_pad - B), (0, 0)))

    const = lambda i: (0, 0)  # weights/biases stay VMEM-resident across batch tiles
    kernel = functools.partial(_stoch_mlp_kernel, min_std=min_std,
                               out_size=out_size, compute_dtype=compute_dtype)

    y = pl.pallas_call(
        kernel,
        out_shape=jax.ShapeDtypeStruct((b_pad, two_out), jnp.float32),
        grid=(b_pad // tb,),
        in_specs=[
            pl.BlockSpec((tb, input_size), lambda i: (i, 0)),   # x: tiled on batch
            pl.BlockSpec((input_size, hidden1), const),
            pl.BlockSpec((1, hidden1), const),
            pl.BlockSpec((hidden1, hidden2), const),
            pl.BlockSpec((1, hidden2), const),
            pl.BlockSpec((hidden2, two_out), const),
            pl.BlockSpec((1, two_out), const),
        ],
        out_specs=pl.BlockSpec((tb, two_out), lambda i: (i, 0)),
        compiler_params=pltpu.CompilerParams(
            dimension_semantics=("parallel",)),
    )(x_c, w1_c, b1_f, w2_c, b2_f, w3_c, b3_f)

    y = y[:B]
    mean = y[:, :out_size]
    std = y[:, out_size:]
    if squeeze and out_size == 1:
        mean = mean[:, 0]
        std = std[:, 0]
    return mean, std


def init_params(key, input_size, hidden_sizes, output_size):
    """Deterministic parameter init. Last layer width = 2*output_size (dist='normal')."""
    sizes = [input_size] + list(hidden_sizes) + [2 * output_size]
    params = []
    for n_in, n_out in zip(sizes[:-1], sizes[1:]):
        key, kw, kb = jax.random.split(key, 3)
        bound = 1.0 / jnp.sqrt(jnp.float32(n_in))
        w = jax.random.uniform(kw, (n_in, n_out), jnp.float32, -bound, bound)
        b = jax.random.uniform(kb, (1, n_out), jnp.float32, -bound, bound)
        params.extend([w, b])
    return params


def _reference_forward(x, params, min_std, compute_dtype):
    """Pure-JAX reference using the same mixed-precision recipe as the kernel."""
    w1, b1, w2, b2, w3, b3 = params
    cd = compute_dtype
    h = jnp.dot(x.astype(cd), w1.astype(cd), preferred_element_type=jnp.float32) + b1
    h = jnp.maximum(h, 0.0)
    h = jnp.dot(h.astype(cd), w2.astype(cd), preferred_element_type=jnp.float32) + b2
    h = jnp.maximum(h, 0.0)
    y = jnp.dot(h.astype(cd), w3.astype(cd), preferred_element_type=jnp.float32) + b3
    mean, std_raw = jnp.split(y, 2, axis=-1)
    std = jnp.logaddexp(std_raw, 0.0) + min_std
    return mean[:, 0], std[:, 0]


if __name__ == "__main__":
    B = 8
    INPUT_SIZE = 32
    HIDDEN_SIZES = [32, 32]
    OUTPUT_SIZE = 1          # squeeze=True path, like the torch module default usage
    MIN_STD = 0.1

    key = jax.random.PRNGKey(0)
    key, kx = jax.random.split(key)
    x = jax.random.normal(kx, (B, INPUT_SIZE), jnp.float32)
    params = init_params(key, INPUT_SIZE, HIDDEN_SIZES, OUTPUT_SIZE)

    mean, std = stoch_mlp_forward(x, params, min_std=MIN_STD, squeeze=True)
    jax.block_until_ready((mean, std))

    ref_mean, ref_std = _reference_forward(x, params, MIN_STD, jnp.bfloat16)

    assert mean.shape == (B,) and std.shape == (B,)
    assert jnp.allclose(mean, ref_mean, atol=1e-3, rtol=1e-3)
    assert jnp.allclose(std, ref_std, atol=1e-3, rtol=1e-3)
    assert bool(jnp.all(std > 0.0))

    print("KERNEL_OK")
</pallas_src>

<mosaic_0001>
module attributes {stable_mosaic.version = 11 : i64} {
  func.func @_stoch_mlp_kernel(%arg0: i32, %arg1: memref<8x32xbf16, #tpu.memory_space<vmem>>, %arg2: memref<32x32xbf16, #tpu.memory_space<vmem>>, %arg3: memref<1x32xf32, #tpu.memory_space<vmem>>, %arg4: memref<32x32xbf16, #tpu.memory_space<vmem>>, %arg5: memref<1x32xf32, #tpu.memory_space<vmem>>, %arg6: memref<32x2xbf16, #tpu.memory_space<vmem>>, %arg7: memref<1x2xf32, #tpu.memory_space<vmem>>, %arg8: memref<8x2xf32, #tpu.memory_space<vmem>>) attributes {dimension_semantics = [#tpu.dimension_semantics<parallel>], iteration_bounds = array<i64: 1>, scalar_prefetch = 0 : i64, scratch_operands = 0 : i64, tpu.core_type = #tpu.core_type<tc>, window_params = [{transform_indices = @transform_0, window_bounds = array<i64: 8, 32>}, {pipeline_mode = #tpu.pipeline_mode<synchronous>, transform_indices = @transform_1, window_bounds = array<i64: 32, 32>}, {pipeline_mode = #tpu.pipeline_mode<synchronous>, transform_indices = @transform_2, window_bounds = array<i64: 1, 32>}, {pipeline_mode = #tpu.pipeline_mode<synchronous>, transform_indices = @transform_3, window_bounds = array<i64: 32, 32>}, {pipeline_mode = #tpu.pipeline_mode<synchronous>, transform_indices = @transform_4, window_bounds = array<i64: 1, 32>}, {pipeline_mode = #tpu.pipeline_mode<synchronous>, transform_indices = @transform_5, window_bounds = array<i64: 32, 2>}, {pipeline_mode = #tpu.pipeline_mode<synchronous>, transform_indices = @transform_6, window_bounds = array<i64: 1, 2>}, {transform_indices = @transform_7, window_bounds = array<i64: 8, 2>}]} {
    %c0 = arith.constant 0 : index
    %c0_0 = arith.constant 0 : index
    %0 = vector.load %arg1[%c0, %c0_0] : memref<8x32xbf16, #tpu.memory_space<vmem>>, vector<8x32xbf16>
    %c0_1 = arith.constant 0 : index
    %c0_2 = arith.constant 0 : index
    %1 = vector.load %arg2[%c0_1, %c0_2] : memref<32x32xbf16, #tpu.memory_space<vmem>>, vector<32x32xbf16>
    %cst = arith.constant dense<0.000000e+00> : vector<8x32xf32>
    %2 = tpu.matmul %0, %1, %cst {dimension_numbers = #tpu.dot_dimension_numbers<[1], [0], [0], [1], [0, 0, 1, 1], [], []>} : vector<8x32xbf16>, vector<32x32xbf16>, vector<8x32xf32> -> vector<8x32xf32>
    %c0_3 = arith.constant 0 : index
    %c0_4 = arith.constant 0 : index
    %3 = vector.load %arg3[%c0_3, %c0_4] : memref<1x32xf32, #tpu.memory_space<vmem>>, vector<1x32xf32>
    %4 = vector.broadcast %3 : vector<1x32xf32> to vector<8x32xf32>
    %5 = arith.addf %2, %4 : vector<8x32xf32>
    %cst_5 = arith.constant 0.000000e+00 : f32
    %6 = vector.broadcast %cst_5 : f32 to vector<8x32xf32>
    %7 = arith.maximumf %5, %6 : vector<8x32xf32>
    %8 = arith.truncf %7 : vector<8x32xf32> to vector<8x32xbf16>
    %c0_6 = arith.constant 0 : index
    %c0_7 = arith.constant 0 : index
    %9 = vector.load %arg4[%c0_6, %c0_7] : memref<32x32xbf16, #tpu.memory_space<vmem>>, vector<32x32xbf16>
    %cst_8 = arith.constant dense<0.000000e+00> : vector<8x32xf32>
    %10 = tpu.matmul %8, %9, %cst_8 {dimension_numbers = #tpu.dot_dimension_numbers<[1], [0], [0], [1], [0, 0, 1, 1], [], []>} : vector<8x32xbf16>, vector<32x32xbf16>, vector<8x32xf32> -> vector<8x32xf32>
    %c0_9 = arith.constant 0 : index
    %c0_10 = arith.constant 0 : index
    %11 = vector.load %arg5[%c0_9, %c0_10] : memref<1x32xf32, #tpu.memory_space<vmem>>, vector<1x32xf32>
    %12 = vector.broadcast %11 : vector<1x32xf32> to vector<8x32xf32>
    %13 = arith.addf %10, %12 : vector<8x32xf32>
    %cst_11 = arith.constant 0.000000e+00 : f32
    %14 = vector.broadcast %cst_11 : f32 to vector<8x32xf32>
    %15 = arith.maximumf %13, %14 : vector<8x32xf32>
    %16 = arith.truncf %15 : vector<8x32xf32> to vector<8x32xbf16>
    %c0_12 = arith.constant 0 : index
    %c0_13 = arith.constant 0 : index
    %17 = vector.load %arg6[%c0_12, %c0_13] : memref<32x2xbf16, #tpu.memory_space<vmem>>, vector<32x2xbf16>
    %cst_14 = arith.constant dense<0.000000e+00> : vector<8x2xf32>
    %18 = tpu.matmul %16, %17, %cst_14 {dimension_numbers = #tpu.dot_dimension_numbers<[1], [0], [0], [1], [0, 0, 1, 1], [], []>} : vector<8x32xbf16>, vector<32x2xbf16>, vector<8x2xf32> -> vector<8x2xf32>
    %c0_15 = arith.constant 0 : index
    %c0_16 = arith.constant 0 : index
    %19 = vector.load %arg7[%c0_15, %c0_16] : memref<1x2xf32, #tpu.memory_space<vmem>>, vector<1x2xf32>
    %20 = vector.broadcast %19 : vector<1x2xf32> to vector<8x2xf32>
    %21 = arith.addf %18, %20 : vector<8x2xf32>
    %22 = tpu.iota {dimensions = array<i32: 1>} : vector<8x2xi32>
    %cst_17 = arith.constant 0.000000e+00 : f32
    %23 = vector.broadcast %cst_17 : f32 to vector<8x2xf32>
    %24 = arith.maximumf %21, %23 : vector<8x2xf32>
    %25 = vector.broadcast %cst_17 : f32 to vector<8x2xf32>
    %26 = arith.subf %21, %25 : vector<8x2xf32>
    %27 = arith.cmpf one, %26, %26 : vector<8x2xf32>
    %28 = vector.broadcast %cst_17 : f32 to vector<8x2xf32>
    %29 = arith.addf %21, %28 : vector<8x2xf32>
    %30 = math.absf %26 : vector<8x2xf32>
    %cst_18 = arith.constant 0.000000e+00 : f32
    %31 = vector.broadcast %cst_18 : f32 to vector<8x2xf32>
    %32 = arith.subf %31, %30 : vector<8x2xf32>
    %33 = math.exp %32 : vector<8x2xf32>
    %34 = math.log1p %33 : vector<8x2xf32>
    %35 = arith.addf %24, %34 : vector<8x2xf32>
    %36 = arith.select %27, %29, %35 : vector<8x2xi1>, vector<8x2xf32>
    %cst_19 = arith.constant 1.000000e-01 : f32
    %37 = vector.broadcast %cst_19 : f32 to vector<8x2xf32>
    %38 = arith.addf %36, %37 : vector<8x2xf32>
    %c1_i32 = arith.constant 1 : i32
    %39 = vector.broadcast %c1_i32 : i32 to vector<8x2xi32>
    %40 = arith.cmpi slt, %22, %39 : vector<8x2xi32>
    %41 = arith.select %40, %21, %38 : vector<8x2xi1>, vector<8x2xf32>
    %c0_20 = arith.constant 0 : index
    %c0_21 = arith.constant 0 : index
    %42 = vector.load %arg8[%c0_20, %c0_21] : memref<8x2xf32, #tpu.memory_space<vmem>>, vector<8x2xf32>
    tpu.vector_store %arg8[%c0_20, %c0_21], %41 {strides = array<i32>} : memref<8x2xf32, #tpu.memory_space<vmem>>, vector<8x2xf32>,
    return
  }
  func.func @transform_0(%arg0: i32) -> (i32, i32) {
    %c0_i32 = arith.constant 0 : i32
    %c0_i32_0 = arith.constant 0 : i32
    return %arg0, %c0_i32 : i32, i32
  }
  func.func @transform_1(%arg0: i32) -> (i32, i32) {
    %c0_i32 = arith.constant 0 : i32
    %c0_i32_0 = arith.constant 0 : i32
    %c0_i32_1 = arith.constant 0 : i32
    return %c0_i32, %c0_i32_0 : i32, i32
  }
  func.func @transform_2(%arg0: i32) -> (i32, i32) {
    %c0_i32 = arith.constant 0 : i32
    %c0_i32_0 = arith.constant 0 : i32
    %c0_i32_1 = arith.constant 0 : i32
    return %c0_i32, %c0_i32_0 : i32, i32
  }
  func.func @transform_3(%arg0: i32) -> (i32, i32) {
    %c0_i32 = arith.constant 0 : i32
    %c0_i32_0 = arith.constant 0 : i32
    %c0_i32_1 = arith.constant 0 : i32
    return %c0_i32, %c0_i32_0 : i32, i32
  }
  func.func @transform_4(%arg0: i32) -> (i32, i32) {
    %c0_i32 = arith.constant 0 : i32
    %c0_i32_0 = arith.constant 0 : i32
    %c0_i32_1 = arith.constant 0 : i32
    return %c0_i32, %c0_i32_0 : i32, i32
  }
  func.func @transform_5(%arg0: i32) -> (i32, i32) {
    %c0_i32 = arith.constant 0 : i32
    %c0_i32_0 = arith.constant 0 : i32
    %c0_i32_1 = arith.constant 0 : i32
    return %c0_i32, %c0_i32_0 : i32, i32
  }
  func.func @transform_6(%arg0: i32) -> (i32, i32) {
    %c0_i32 = arith.constant 0 : i32
    %c0_i32_0 = arith.constant 0 : i32
    %c0_i32_1 = arith.constant 0 : i32
    return %c0_i32, %c0_i32_0 : i32, i32
  }
  func.func @transform_7(%arg0: i32) -> (i32, i32) {
    %c0_i32 = arith.constant 0 : i32
    %c0_i32_0 = arith.constant 0 : i32
    return %arg0, %c0_i32 : i32, i32
  }
}

</mosaic_0001>

<bundles_post_ra>
// kernel: tpu_custom_call.1
= control target key start
LH: loop header
LB: loop body
LE: loop exit
PB: predicated region body
PF: predicated region fallthrough
CT: control target
= control target key end

     0   :  { %12 = vsyncpa [#allocation3], 0  ;;  %s472_s0 = inlined_call_operand.hbm [shape: bf16[8,32], index: 0, kind: input, shape index: {}]   ;;  %s473_s1 = inlined_call_operand.vmem [shape: bf16[32,32], index: 1, kind: input, shape index: {}]   ;;  %s474_s2 = inlined_call_operand.vmem [shape: f32[1,32], index: 2, kind: input, shape index: {}]   ;;  %s475_s3 = inlined_call_operand.hbm [shape: bf16[32,32], index: 3, kind: input, shape index: {}]   ;;  %s476_s4 = inlined_call_operand.vmem [shape: f32[1,32], index: 4, kind: input, shape index: {}]   ;;  %s477_s5 = inlined_call_operand.vmem [shape: bf16[32,2], index: 5, kind: input, shape index: {}]   ;;  %s478_s6 = inlined_call_operand.vmem [shape: f32[1,2], index: 6, kind: input, shape index: {}]   ;;  %s479_s7 = inlined_call_operand.vmem [shape: f32[8,2], index: 7, kind: output, shape index: {}]  }
   0x1   :  { %13 = vsyncpa [#allocation5], 0  ;;  %s393_s24 = smov [#allocation2]   ;;  %s394_s26 = smov [#allocation4]  }
   0x2   :  { %s20_s25 = sshll.u32 %s393_s24, 4  ;;  %s33_s27 = sshll.u32 %s394_s26, 4  ;;  %s21_s25 = int_to_ptr.vmem [resolvable:$true] %s20_s25  ;;  %s34_s27 = int_to_ptr.vmem [resolvable:$true] %s33_s27 }
   0x3   :  { %s357_s28 = scalar_lea.vmem %s21_s25, 64  ;;  %p362_p1 = scmp.lt.s32.totalorder %s21_s25, %s21_s25 }
   0x4   :  { %p358_p0 = scmp.ne.s32.totalorder %s21_s25, %s357_s28  ;;  %p363_p2 = scmp.lt.s32.totalorder %s357_s28, %s357_s28 }
   0x6   :  { %p364_p3 = por %p363_p2, %p362_p1 }
   0x8   :  { %p365_p4 = pnand %p364_p3, %p358_p0 }
   0xa   :  { %368 = shalt.err (!%p365_p4)
}
   0xb   :  { %23 = dma.hbm_to_vmem [thread:$0]  %s472_s0, 64, %s21_s25, [#allocation3]  }
   0xc   :  { %s377_s8 = scalar_lea.vmem %s34_s27, 256  ;;  %p382_p6 = scmp.lt.s32.totalorder %s34_s27, %s34_s27 }
   0xd   :  { %p378_p5 = scmp.ne.s32.totalorder %s34_s27, %s377_s8  ;;  %p383_p7 = scmp.lt.s32.totalorder %s377_s8, %s377_s8 }
   0xf   :  { %p384_p8 = por %p383_p7, %p382_p6 }
  0x11   :  { %p385_p9 = pnand %p384_p8, %p378_p5 }
  0x13   :  { %388 = shalt.err (!%p385_p9)
}
  0x14   :  { %s395_s9 = smov 64   ;;  %s396_s10 = smov 4  }
  0x15   :  { %39 = dma.hbm_to_vmem [thread:$0]  %s475_s3, 256, %s34_s27, [#allocation5], %s395_s9, %s395_s9, %s396_s10  }
  0x16   :  { %389 = dma.done.wait [#allocation3], 64  }
  0x17   :  { %390 = vsyncadd [#allocation3], 4294967232 }
  0x18   :  { %391 = dma.done.wait [#allocation5], 256  }
  0x19   :  { %392 = vsyncadd [#allocation5], 4294967040  ;;  %v397_v0 = vmov 0.0   ;;  %vm398_vm0 = vmmov 0   ;;  %v339_v1 = vld [vmem:[%s473_s1 + $0x8] sm:$0xff]   ;;  %v340_v2 = vld [vmem:[%s473_s1] sm:$0xff]   ;;  %v257_v37 = vlaneseq }
  0x1a   :  { %309 = vmatprep.subr.bf16.mxu0 %v397_v0  ;;  %313 = vmatprep.mubr.msk.bf16.mxu0 %vm398_vm0, %v397_v0  ;;  %v53_v3 = vld [vmem:[#allocation2] sm:$0xf]  ;;  %vm77_vm1 = vcmask 261120   ;;  %v341_v4 = vld [vmem:[#allocation4 + $0x8] sm:$0xff]   ;;  %v342_v5 = vld [vmem:[#allocation4] sm:$0xff]   ;;  %vm280_vm5 = vcmask 15360  }
  0x1b   :  { %317 = vmatprep.subr.bf16.mxu1 %v397_v0  ;;  %321 = vmatprep.mubr.msk.bf16.mxu1 %vm398_vm0, %v397_v0  ;;  %v343_v6 = vld [vmem:[%s477_s5 + $0x8] sm:$0xff]   ;;  %v288_v7 = vld [vmem:[%s474_s2] ss:$0 sm:$0xff]  ;;  %v258_v42 = vand.u32 127, %v257_v37 }
  0x1c   :  { %310 = vmatpush3.bf16.msra.mxu0 %v339_v1  ;;  %318 = vmatpush3.bf16.msra.mxu1 %v341_v4  ;;  %v344_v15 = vld [vmem:[%s477_s5] sm:$0xff]  }
  0x1d   :  { %311 = vmatprep.subr.bf16.mxu0 %v397_v0  ;;  %319 = vmatprep.subr.bf16.mxu1 %v397_v0  ;;  %v292_v16 = vld [vmem:[%s476_s4] ss:$0 sm:$0xff]  ;;  %vm278_vm4 = vcmp.lt.s32.totalorder %v258_v42, 1 }
  0x1e   :  { %v296_v24 = vld [vmem:[%s478_s6] ss:$0 sm:$0xff] }
  0x20   :  { %312 = vmatpush3.bf16.msra.mxu0 %v340_v2  ;;  %320 = vmatpush3.bf16.msra.mxu1 %v342_v5 }
  0x21   :  { %325 = vmatprep.subr.bf16.mxu0 %v397_v0 }
  0x23   :  { %314 = vmatmul.mubr.msk.bf16.vlgmr.msra.gmra.mxu0 %vm77_vm1, %v53_v3 }
  0x24   :  { %329 = vmatprep.mubr.msk.bf16.mxu0 %vm398_vm0, %v397_v0  ;;  %326 = vmatpush3.bf16.msra.mxu0 %v343_v6 }
  0x25   :  { %327 = vmatprep.subr.bf16.mxu0 %v397_v0 }
  0x28   :  { %328 = vmatpush3.bf16.msra.mxu0 %v344_v15 }
  0xe3   :  { %v115_v8 = vpop.f32.mrf.mxu0 }
  0xe4   :  { %v116_v9 = vadd.f32 %v288_v7, %v115_v8 }
  0xe5   :  { %v315_v10 = vpop.f32.mrf.mxu0 }
  0xe6   :  { %v121_v11 = vmax.f32 %v116_v9, 0.0 }
  0xe7   :  { %v118_v12 = vpop.f32.mrf.mxu0 }
  0xe8   :  { %v122_v13 = vpack.c.bf16 %v121_v11, %v121_v11 }
  0xe9   :  { %v316_v14 = vpop.f32.mrf.mxu0 }
  0xea   :  { %322 = vmatmul.mubr.msk.bf16.vlgmr.msra.gmra.mxu1 %vm77_vm1, %v122_v13 }
 0x1aa   :  { %v183_v17 = vpop.f32.mrf.mxu1 }
 0x1ab   :  { %v184_v18 = vadd.f32 %v292_v16, %v183_v17 }
 0x1ac   :  { %v323_v19 = vpop.f32.mrf.mxu1 }
 0x1ad   :  { %v189_v20 = vmax.f32 %v184_v18, 0.0 }
 0x1ae   :  { %v186_v21 = vpop.f32.mrf.mxu1 }
 0x1af   :  { %v190_v22 = vpack.c.bf16 %v189_v20, %v189_v20 }
 0x1b0   :  { %v324_v23 = vpop.f32.mrf.mxu1 }
 0x1b1   :  { %330 = vmatmul.mubr.msk.bf16.vlgmr.msra.gmra.mxu0 %vm77_vm1, %v190_v22 }
 0x271   :  { %v251_v25 = vpop.f32.mrf.mxu0 }
 0x272   :  { %v252_v26 = vadd.f32 %v296_v24, %v251_v25 }
 0x273   :  { %v331_v27 = vpop.f32.mrf.mxu0 }
 0x274   :  { %v262_v28 = vand.u32 2147483647, %v252_v26  ;;  %v259_v43 = vmax.f32 %v252_v26, 0.0  ;;  %vm260_vm3 = vcmp.ne.f32.partialorder %v252_v26, %v252_v26 }
 0x275   :  { %v254_v29 = vpop.f32.mrf.mxu0 }
 0x276   :  { %v263_v30 = vsub.f32 0.0, %v262_v28 }
 0x277   :  { %v332_v31 = vpop.f32.mrf.mxu0 }
 0x278   :  { %v264_v32 = vmul.f32 1.442695, %v263_v30 }
 0x27a   :  { %345 = vpow2.f32 %v264_v32 }
 0x287   :  { %v346_v33 = vpop.eup %345 }
 0x288   :  { %v266_v34 = vadd.f32 1.0, %v346_v33  ;;  %v269_v35 = vmul.f32 -0.5, %v346_v33  ;;  %v272_v38 = vand.u32 2147483647, %v346_v33 }
 0x28a   :  { %347 = vlog2.f32 %v266_v34  ;;  %v270_v36 = vadd.f32 1.0, %v269_v35  ;;  %vm273_vm2 = vcmp.lt.f32.partialorder %v272_v38, 0.0004427343 }
 0x28c   :  { %v271_v41 = vmul.f32 %v346_v33, %v270_v36 }
 0x297   :  { %v348_v39 = vpop.eup %347 }
 0x298   :  { %v268_v40 = vmul.f32 0.6931472, %v348_v39 }
 0x29a   :  { %v274_v44 = vsel %vm273_vm2, %v271_v41, %v268_v40 }
 0x29b   :  { %v275_v45 = vadd.f32 %v274_v44, %v259_v43 }
 0x29d   :  { %v276_v46 = vsel %vm260_vm3, %v252_v26, %v275_v45 }
 0x29e   :  { %v277_v47 = vadd.f32 0.1, %v276_v46 }
 0x2a0   :  { %v279_v48 = vsel %vm278_vm4, %v252_v26, %v277_v47 }
 0x2a1   :  { %281 = vst.msk [vmem:[%s479_s7] sm:$0xff] %vm280_vm5, %v279_v48 }
 0x2a2   :  { %286 = vsyncpa [#allocation3], 1 }
 0x2a3   :  { %287 = vsyncpa [#allocation5], 1 }

</bundles_post_ra>
